<compile_context>
chip_gen: v5e
topology: v5e:2x2
jax: 0.10.0
libtpu: 0.0.40
codegen_flags: <defaults>
</compile_context>

<pallas_src>
import functools

import jax
import jax.numpy as jnp
from jax.experimental import pallas as pl
from jax.experimental.pallas import tpu as pltpu

LANE = 128


def _ce_kernel(x_ref, t_ref, out_ref, acc_ref, *, s_total: int, tile: int,
               need_mask: bool):
    """Soft-target cross entropy over the channel (sublane) axis.

    x_ref, t_ref: (C, tile) blocks (batch dim squeezed by the BlockSpec).
    out_ref:      (1, LANE) per-batch partial sum (lane-broadcast scalar).
    acc_ref:      (1, tile) VMEM running per-lane partial sums.
    """
    j = pl.program_id(1)          # spatial tile index (reduction axis)

    @pl.when(j == 0)
    def _():
        acc_ref[...] = jnp.zeros_like(acc_ref)

    x = x_ref[...].astype(jnp.float32)        # (C, tile)
    t = t_ref[...].astype(jnp.float32)        # (C, tile)

    # log-softmax over channels (sublanes), vectorized over lanes.
    m = jnp.max(x, axis=0, keepdims=True)                                # (1,T)
    lse = m + jnp.log(jnp.sum(jnp.exp(x - m), axis=0, keepdims=True))    # (1,T)

    # per-position CE: sum_c t_c*(lse - x_c) == lse*sum_c t_c - sum_c t_c*x_c
    sum_t = jnp.sum(t, axis=0, keepdims=True)                            # (1,T)
    sum_tx = jnp.sum(t * x, axis=0, keepdims=True)                       # (1,T)
    contrib = lse * sum_t - sum_tx                                       # (1,T)

    if need_mask:
        # Ragged spatial tail: lanes at/past s_total hold garbage -> zero them.
        lane = jax.lax.broadcasted_iota(jnp.int32, (1, tile), 1)
        contrib = jnp.where(j * tile + lane < s_total, contrib, 0.0)

    acc_ref[...] += contrib

    @pl.when(j == pl.num_programs(1) - 1)
    def _():
        # Single cross-lane reduction per batch element, lane-broadcast store.
        total = jnp.sum(acc_ref[...], keepdims=True)                     # (1,1)
        out_ref[...] = jnp.broadcast_to(total, (1, LANE))


def ce_loss(in_put, target):
    """Pallas TPU implementation of CELoss.forward: matches
    F.cross_entropy(in_put, target.float()) where target has the same shape as
    in_put (per-class probabilities), reduction='mean'."""
    x = jnp.asarray(in_put)
    t = jnp.asarray(target)
    assert x.shape == t.shape and x.ndim >= 2, (
        "CELoss with float targets requires logits-shaped targets")

    n, c = x.shape[0], x.shape[1]
    s = 1
    for d in x.shape[2:]:
        s *= d

    x3 = x.reshape(n, c, s)
    t3 = t.reshape(n, c, s)
    isx = x3.dtype.itemsize
    ist = t3.dtype.itemsize

    # Small-S fast path: fold batch onto the lane axis with a single transpose
    # when per-batch slabs are tiny or S < 128 (avoids lane-padding waste and
    # one undersized grid step per batch element).
    fold = n > 1 and (s < LANE or c * s * (isx + ist) < (256 << 10))
    if fold:
        x3 = x3.transpose(1, 0, 2).reshape(1, c, n * s)
        t3 = t3.transpose(1, 0, 2).reshape(1, c, n * s)
        n_eff, s_eff = 1, n * s
    else:
        n_eff, s_eff = n, s

    # Lane tile: multiple of 128, sized so 2 inputs x 2 pipeline buffers plus
    # the f32 accumulator stay within ~32 MiB of VMEM (dtype + sublane-padding
    # aware).  vmem_limit_bytes below raises the scoped limit accordingly.
    def _sublane_pad(ch, item):
        mult = 8 * max(1, 4 // item)      # f32 -> 8, bf16 -> 16, int8 -> 32
        return -(-ch // mult) * mult

    vmem_budget = 32 << 20
    bytes_per_lane = (2 * _sublane_pad(c, isx) * isx
                      + 2 * _sublane_pad(c, ist) * ist
                      + 8 * 4)            # (1, tile) f32 acc pads to 8 sublanes
    # TODO(synk): very large C (e.g. LLM vocab) needs a channel-chunked /
    # online-softmax variant; here we clamp to a 128-lane tile and rely on the
    # full (C, 128) block fitting in VMEM.
    tile_cap = max(LANE, (vmem_budget // bytes_per_lane) // LANE * LANE)
    s_pad128 = -(-s_eff // LANE) * LANE
    tile = min(s_pad128, tile_cap)
    num_tiles = -(-s_eff // tile)
    need_mask = (s_eff % tile) != 0
    inv_count = 1.0 / float(n * s)        # 'mean' over N * spatial positions

    kernel = functools.partial(_ce_kernel, s_total=s_eff, tile=tile,
                               need_mask=need_mask)
    in_spec = pl.BlockSpec((None, c, tile), lambda i, j: (i, 0, j))

    partials = pl.pallas_call(
        kernel,
        out_shape=jax.ShapeDtypeStruct((n_eff, 1, LANE), jnp.float32),
        grid_spec=pltpu.PrefetchScalarGridSpec(
            num_scalar_prefetch=0,
            grid=(n_eff, num_tiles),
            in_specs=[in_spec, in_spec],
            out_specs=pl.BlockSpec((None, 1, LANE), lambda i, j: (i, 0, 0)),
            scratch_shapes=[pltpu.VMEM((1, tile), jnp.float32)],
        ),
        compiler_params=pltpu.CompilerParams(
            # Batch axis is fully independent (per-batch output block, acc
            # reset at j==0) -> "parallel" lets v7x shard it over both TCs.
            # Spatial axis carries the running reduction -> "arbitrary".
            dimension_semantics=("parallel", "arbitrary"),
            vmem_limit_bytes=48 << 20,
        ),
    )(x3, t3)

    # Tiny epilogue in plain JAX: n_eff scalars -> mean.
    return jnp.sum(partials[:, 0, 0]) * inv_count


if __name__ == "__main__":
    key = jax.random.PRNGKey(0)
    kx, kt, kx2, kt2 = jax.random.split(key, 4)

    # Case 1: NCHW segmentation-style logits with one-hot float targets
    # (CELoss casts target to float -> F.cross_entropy treats it as per-class
    # probabilities).  Small S -> exercises the batch-fold fast path.
    N, C, H, W = 2, 4, 16, 16
    x = jax.random.normal(kx, (N, C, H, W), dtype=jnp.float32)
    labels = jax.random.randint(kt, (N, H, W), 0, C)
    target = jax.nn.one_hot(labels, C, dtype=jnp.float32).transpose(0, 3, 1, 2)

    loss = jax.block_until_ready(ce_loss(x, target))
    logp = jax.nn.log_softmax(x, axis=1)
    ref = -jnp.mean(jnp.sum(target * logp, axis=1))
    assert jnp.allclose(loss, ref, atol=1e-5, rtol=1e-5), (loss, ref)

    # Case 2: ragged spatial size (not a multiple of 128), above the fold
    # threshold -> exercises the parallel batch axis + in-kernel tail mask.
    N2, C2, H2, W2 = 2, 3, 127, 129
    x2 = jax.random.normal(kx2, (N2, C2, H2, W2), dtype=jnp.float32)
    labels2 = jax.random.randint(kt2, (N2, H2, W2), 0, C2)
    target2 = jax.nn.one_hot(labels2, C2, dtype=jnp.float32).transpose(0, 3, 1, 2)

    loss2 = jax.block_until_ready(ce_loss(x2, target2))
    logp2 = jax.nn.log_softmax(x2, axis=1)
    ref2 = -jnp.mean(jnp.sum(target2 * logp2, axis=1))
    assert jnp.allclose(loss2, ref2, atol=1e-5, rtol=1e-5), (loss2, ref2)

    print("KERNEL_OK")
</pallas_src>

<mosaic_0001>
module attributes {stable_mosaic.version = 11 : i64} {
  func.func @_ce_kernel(%arg0: i32, %arg1: i32, %arg2: memref<1x4x512xf32, #tpu.memory_space<vmem>>, %arg3: memref<1x4x512xf32, #tpu.memory_space<vmem>>, %arg4: memref<1x1x128xf32, #tpu.memory_space<vmem>>, %arg5: memref<1x512xf32, #tpu.memory_space<vmem>>) attributes {dimension_semantics = [#tpu.dimension_semantics<parallel>, #tpu.dimension_semantics<arbitrary>], iteration_bounds = array<i64: 1, 1>, scalar_prefetch = 0 : i64, scratch_operands = 1 : i64, tpu.core_type = #tpu.core_type<tc>, window_params = [{transform_indices = @transform_0, window_bounds = array<i64: 1, 4, 512>}, {transform_indices = @transform_1, window_bounds = array<i64: 1, 4, 512>}, {transform_indices = @transform_2, window_bounds = array<i64: 1, 1, 128>}]} {
    %c0_i32 = arith.constant 0 : i32
    %0 = arith.cmpi eq, %arg1, %c0_i32 : i32
    %1 = arith.extui %0 : i1 to i32
    %c0_i32_0 = arith.constant 0 : i32
    %2 = arith.cmpi ne, %1, %c0_i32_0 : i32
    scf.if %2 {
      %cst_15 = arith.constant 0.000000e+00 : f32
      %29 = vector.broadcast %cst_15 : f32 to vector<1x512xf32>
      %c0_16 = arith.constant 0 : index
      %c0_17 = arith.constant 0 : index
      %30 = vector.load %arg5[%c0_16, %c0_17] : memref<1x512xf32, #tpu.memory_space<vmem>>, vector<1x512xf32>
      tpu.vector_store %arg5[%c0_16, %c0_17], %29 {strides = array<i32>} : memref<1x512xf32, #tpu.memory_space<vmem>>, vector<1x512xf32>,
    } else {
    }
    %c0 = arith.constant 0 : index
    %c0_1 = arith.constant 0 : index
    %c0_2 = arith.constant 0 : index
    %3 = vector.load %arg2[%c0, %c0_1, %c0_2] : memref<1x4x512xf32, #tpu.memory_space<vmem>>, vector<1x4x512xf32>
    %4 = vector.shape_cast %3 : vector<1x4x512xf32> to vector<4x512xf32>
    %c0_3 = arith.constant 0 : index
    %c0_4 = arith.constant 0 : index
    %c0_5 = arith.constant 0 : index
    %5 = vector.load %arg3[%c0_3, %c0_4, %c0_5] : memref<1x4x512xf32, #tpu.memory_space<vmem>>, vector<1x4x512xf32>
    %6 = vector.shape_cast %5 : vector<1x4x512xf32> to vector<4x512xf32>
    %cst = arith.constant dense<0xFF800000> : vector<512xf32>
    %7 = vector.multi_reduction <maximumf>, %4, %cst [0] : vector<4x512xf32> to vector<512xf32>
    %8 = vector.shape_cast %7 : vector<512xf32> to vector<1x512xf32>
    %9 = vector.broadcast %8 : vector<1x512xf32> to vector<4x512xf32>
    %10 = arith.subf %4, %9 : vector<4x512xf32>
    %11 = math.exp %10 : vector<4x512xf32>
    %cst_6 = arith.constant dense<0.000000e+00> : vector<512xf32>
    %12 = vector.multi_reduction <add>, %11, %cst_6 [0] : vector<4x512xf32> to vector<512xf32>
    %13 = vector.shape_cast %12 : vector<512xf32> to vector<1x512xf32>
    %14 = math.log %13 : vector<1x512xf32>
    %15 = arith.addf %8, %14 : vector<1x512xf32>
    %cst_7 = arith.constant dense<0.000000e+00> : vector<512xf32>
    %16 = vector.multi_reduction <add>, %6, %cst_7 [0] : vector<4x512xf32> to vector<512xf32>
    %17 = vector.shape_cast %16 : vector<512xf32> to vector<1x512xf32>
    %18 = arith.mulf %6, %4 : vector<4x512xf32>
    %cst_8 = arith.constant dense<0.000000e+00> : vector<512xf32>
    %19 = vector.multi_reduction <add>, %18, %cst_8 [0] : vector<4x512xf32> to vector<512xf32>
    %20 = vector.shape_cast %19 : vector<512xf32> to vector<1x512xf32>
    %21 = arith.mulf %15, %17 : vector<1x512xf32>
    %22 = arith.subf %21, %20 : vector<1x512xf32>
    %c0_9 = arith.constant 0 : index
    %c0_10 = arith.constant 0 : index
    %23 = vector.load %arg5[%c0_9, %c0_10] : memref<1x512xf32, #tpu.memory_space<vmem>>, vector<1x512xf32>
    %24 = arith.addf %23, %22 : vector<1x512xf32>
    %c0_11 = arith.constant 0 : index
    %c0_12 = arith.constant 0 : index
    %25 = vector.load %arg5[%c0_11, %c0_12] : memref<1x512xf32, #tpu.memory_space<vmem>>, vector<1x512xf32>
    tpu.vector_store %arg5[%c0_11, %c0_12], %24 {strides = array<i32>} : memref<1x512xf32, #tpu.memory_space<vmem>>, vector<1x512xf32>,
    %c0_i32_13 = arith.constant 0 : i32
    %26 = arith.cmpi eq, %arg1, %c0_i32_13 : i32
    %27 = arith.extui %26 : i1 to i32
    %c0_i32_14 = arith.constant 0 : i32
    %28 = arith.cmpi ne, %27, %c0_i32_14 : i32
    scf.if %28 {
      %c0_15 = arith.constant 0 : index
      %c0_16 = arith.constant 0 : index
      %29 = vector.load %arg5[%c0_15, %c0_16] : memref<1x512xf32, #tpu.memory_space<vmem>>, vector<1x512xf32>
      %30 = vector.shape_cast %29 : vector<1x512xf32> to vector<1x1x512xf32>
      %cst_17 = arith.constant dense<0.000000e+00> : vector<1xf32>
      %31 = vector.multi_reduction <add>, %30, %cst_17 [1, 2] : vector<1x1x512xf32> to vector<1xf32>
      %32 = vector.shape_cast %31 : vector<1xf32> to vector<1x1x1xf32>
      %33 = vector.extract %32[0, 0, 0] : f32 from vector<1x1x1xf32>
      %34 = vector.broadcast %33 : f32 to vector<1x1xf32>
      %35 = vector.shape_cast %34 : vector<1x1xf32> to vector<1x1xf32>
      %36 = vector.broadcast %35 : vector<1x1xf32> to vector<1x128xf32>
      %c0_18 = arith.constant 0 : index
      %c0_19 = arith.constant 0 : index
      %c0_20 = arith.constant 0 : index
      %37 = vector.load %arg4[%c0_18, %c0_19, %c0_20] : memref<1x1x128xf32, #tpu.memory_space<vmem>>, vector<1x1x128xf32>
      %38 = vector.shape_cast %37 : vector<1x1x128xf32> to vector<1x128xf32>
      %39 = vector.shape_cast %36 : vector<1x128xf32> to vector<1x1x128xf32>
      tpu.vector_store %arg4[%c0_18, %c0_19, %c0_20], %39 {strides = array<i32>} : memref<1x1x128xf32, #tpu.memory_space<vmem>>, vector<1x1x128xf32>,
    } else {
    }
    return
  }
  func.func @transform_0(%arg0: i32, %arg1: i32) -> (i32, i32, i32) {
    %c0_i32 = arith.constant 0 : i32
    %c0_i32_0 = arith.constant 0 : i32
    return %arg0, %c0_i32, %arg1 : i32, i32, i32
  }
  func.func @transform_1(%arg0: i32, %arg1: i32) -> (i32, i32, i32) {
    %c0_i32 = arith.constant 0 : i32
    %c0_i32_0 = arith.constant 0 : i32
    return %arg0, %c0_i32, %arg1 : i32, i32, i32
  }
  func.func @transform_2(%arg0: i32, %arg1: i32) -> (i32, i32, i32) {
    %c0_i32 = arith.constant 0 : i32
    %c0_i32_0 = arith.constant 0 : i32
    %c0_i32_1 = arith.constant 0 : i32
    return %arg0, %c0_i32, %c0_i32_0 : i32, i32, i32
  }
}

</mosaic_0001>

<bundles_post_ra>
// kernel: tpu_custom_call.1
= control target key start
LH: loop header
LB: loop body
LE: loop exit
PB: predicated region body
PF: predicated region fallthrough
CT: control target
= control target key end

     0   :  { %7 = vsyncpa [#allocation4], 0  ;;  %s507_s0 = inlined_call_operand.hbm [shape: f32[1,4,512], index: 0, kind: input, shape index: {}]   ;;  %s508_s1 = inlined_call_operand.hbm [shape: f32[1,4,512], index: 1, kind: input, shape index: {}]   ;;  %s509_s2 = inlined_call_operand.hbm [shape: f32[1,1,128], index: 2, kind: output, shape index: {}]  }
   0x1   :  { %8 = vsyncpa [#allocation7], 0 }
   0x2   :  { %9 = vsyncpa [#allocation5], 0  ;;  %s15_s11 = sshll.u32 %s507_s0, 4  ;;  %s422_s12 = smov [#allocation3]   ;;  %s16_s11 = int_to_ptr.hbm [resolvable:$true] %s15_s11 }
   0x3   :  { %s17_s13 = sshll.u32 %s422_s12, 4  ;;  %s26_s16 = sshll.u32 %s508_s1, 4  ;;  %s18_s13 = int_to_ptr.vmem [resolvable:$true] %s17_s13  ;;  %s27_s16 = int_to_ptr.hbm [resolvable:$true] %s26_s16 }
   0x4   :  { %20 = dma.hbm_to_vmem [thread:$0]  %s16_s11, 256, %s18_s13, [#allocation4]  }
   0x5   :  { %s423_s17 = smov [#allocation6]  }
   0x6   :  { %s28_s18 = sshll.u32 %s423_s17, 4  ;;  %s29_s18 = int_to_ptr.vmem [resolvable:$true] %s28_s18 }
   0x7   :  { %31 = dma.hbm_to_vmem [thread:$0]  %s27_s16, 256, %s29_s18, [#allocation7]  }
   0x8   :  { %416 = dma.done.wait [#allocation4], 256  }
   0x9   :  { %417 = vsyncadd [#allocation4], 4294967040 }
   0xa   :  { %418 = dma.done.wait [#allocation7], 256  }
   0xb   :  { %419 = vsyncadd [#allocation7], 4294967040  ;;  %v44_v0 = vlaneseq  ;;  %v424_v2 = vmov 0.0   ;;  %v453_v3 = vld [vmem:[#allocation3] sm:$0xff]  ;;  %v455_v4 = vld [vmem:[#allocation3 + $0x8] sm:$0xff]  ;;  %vm66_vm1 = vcmask 1043456  }
   0xc   :  { %55 = vst [vmem:[#allocation1] ss:$2 sm:$0xff] %v453_v3  ;;  %v51_v47 = vld [vmem:[#allocation6] sm:$0xff]  ;;  %v52_v48 = vld [vmem:[#allocation6 + $0x8] sm:$0xff]  ;;  %vm264_vm2 = vcmask 1040384   ;;  %vm266_vm3 = vcmask 1042434  }
   0xd   :  { %vm447_vm0 = vcmp.lt.s32.totalorder %v44_v0, 512  ;;  %57 = vst [vmem:[#allocation1 + $0x10] ss:$2 sm:$0xff] %v455_v4  ;;  %vm268_vm4 = vcmask 1041408   ;;  %s425_s0 = smov [#allocation8]   ;;  %s315_s21 = sshll.u32 %s509_s2, 4  ;;  %s316_s21 = int_to_ptr.hbm [resolvable:$true] %s315_s21 }
   0xe   :  { %48 = vst.msk [vmem:[#allocation2] sm:$0xf] %vm447_vm0, %v424_v2  ;;  %v205_v2 = vmul.f32 %v51_v47, %v453_v3  ;;  %s313_s1 = sshll.u32 %s425_s0, 4  ;;  %s314_s1 = int_to_ptr.vmem [resolvable:$true] %s313_s1 }
  0x13   :  { %v58_v5 = vld.sshfl [vmem:[#allocation1] sm:$0xff pattern:$0x75316420]  ;;  %v59_v6 = vld.sshfl [vmem:[#allocation1 + $0x8] sm:$0xff pattern:$0x75316420] }
  0x14   :  { %v60_v7 = vld.sshfl [vmem:[#allocation1 + $0x10] sm:$0xff pattern:$0x75316420]  ;;  %v61_v8 = vld.sshfl [vmem:[#allocation1 + $0x18] sm:$0xff pattern:$0x75316420] }
  0x15   :  { %v67_v9 = vsel %vm66_vm1, %v58_v5, -inf  ;;  %v74_v10 = vsel %vm66_vm1, %v59_v6, -inf  ;;  %v81_v11 = vsel %vm66_vm1, %v60_v7, -inf  ;;  %v88_v12 = vsel %vm66_vm1, %v61_v8, -inf }
  0x16   :  { %v68_v13 = vrot.slane %v67_v9, 4  ;;  %v75_v14 = vrot.slane %v74_v10, 4  ;;  %v82_v15 = vrot.slane %v81_v11, 4  ;;  %v89_v16 = vrot.slane %v88_v12, 4 }
  0x18   :  { %v69_v17 = vmax.f32 %v67_v9, %v68_v13  ;;  %v76_v18 = vmax.f32 %v74_v10, %v75_v14  ;;  %v83_v19 = vmax.f32 %v81_v11, %v82_v15  ;;  %v90_v20 = vmax.f32 %v88_v12, %v89_v16 }
  0x19   :  { %v206_v9 = vmul.f32 %v52_v48, %v455_v4 }
  0x1a   :  { %v70_v21 = vrot.slane %v69_v17, 2  ;;  %v77_v22 = vrot.slane %v76_v18, 2  ;;  %v84_v23 = vrot.slane %v83_v19, 2  ;;  %v91_v24 = vrot.slane %v90_v20, 2 }
  0x1c   :  { %v71_v25 = vmax.f32 %v69_v17, %v70_v21  ;;  %v78_v26 = vmax.f32 %v76_v18, %v77_v22  ;;  %v85_v27 = vmax.f32 %v83_v19, %v84_v23  ;;  %v92_v28 = vmax.f32 %v90_v20, %v91_v24 }
  0x1e   :  { %v72_v29 = vrot.slane %v71_v25, 1  ;;  %v79_v30 = vrot.slane %v78_v26, 1  ;;  %v86_v31 = vrot.slane %v85_v27, 1  ;;  %v93_v32 = vrot.slane %v92_v28, 1 }
  0x20   :  { %v463_v33 = vmax.f32 %v71_v25, %v72_v29  ;;  %v465_v34 = vmax.f32 %v78_v26, %v79_v30  ;;  %v467_v35 = vmax.f32 %v85_v27, %v86_v31  ;;  %v469_v36 = vmax.f32 %v92_v28, %v93_v32 }
  0x22   :  { %v99_v37 = vrot.slane %v465_v34, 4  ;;  %v100_v38 = vrot.slane %v469_v36, 4 }
  0x24   :  { %v101_v39 = vsel %vm66_vm1, %v463_v33, %v99_v37  ;;  %v102_v40 = vsel %vm66_vm1, %v467_v35, %v100_v38 }
  0x25   :  { %v105_v41 = vsub.f32 %v453_v3, %v101_v39  ;;  %v106_v42 = vsub.f32 %v455_v4, %v102_v40 }
  0x27   :  { %v107_v43 = vmul.f32 1.442695, %v105_v41  ;;  %v109_v44 = vmul.f32 1.442695, %v106_v42 }
  0x29   :  { %332 = vpow2.f32 %v107_v43 }
  0x2a   :  { %334 = vpow2.f32 %v109_v44 }
  0x2f   :  { %v333_v45 = vpop.eup %332 }
  0x30   :  { %v335_v46 = vpop.eup %334  ;;  %113 = vst [vmem:[#allocation1] ss:$2 sm:$0xff] %v333_v45 }
  0x31   :  { %115 = vst [vmem:[#allocation1 + $0x10] ss:$2 sm:$0xff] %v335_v46 }
  0x37   :  { %v116_v49 = vld.sshfl [vmem:[#allocation1] sm:$0xff pattern:$0x75316420]  ;;  %v117_v50 = vld.sshfl [vmem:[#allocation1 + $0x8] sm:$0xff pattern:$0x75316420] }
  0x38   :  { %v118_v51 = vld.sshfl [vmem:[#allocation1 + $0x10] sm:$0xff pattern:$0x75316420]  ;;  %v119_v52 = vld.sshfl [vmem:[#allocation1 + $0x18] sm:$0xff pattern:$0x75316420] }
  0x39   :  { %v124_v53 = vsel %vm66_vm1, %v116_v49, 0.0  ;;  %v131_v54 = vsel %vm66_vm1, %v117_v50, 0.0  ;;  %v138_v55 = vsel %vm66_vm1, %v118_v51, 0.0  ;;  %v145_v56 = vsel %vm66_vm1, %v119_v52, 0.0  ;;  %166 = vst [vmem:[#allocation1] ss:$2 sm:$0xff] %v51_v47 }
  0x3a   :  { %v125_v57 = vrot.slane %v124_v53, 4  ;;  %v132_v58 = vrot.slane %v131_v54, 4  ;;  %v139_v59 = vrot.slane %v138_v55, 4  ;;  %v146_v60 = vrot.slane %v145_v56, 4  ;;  %168 = vst [vmem:[#allocation1 + $0x10] ss:$2 sm:$0xff] %v52_v48 }
  0x3c   :  { %v126_v61 = vadd.f32 %v125_v57, %v124_v53  ;;  %v133_v62 = vadd.f32 %v132_v58, %v131_v54  ;;  %v140_v63 = vadd.f32 %v139_v59, %v138_v55  ;;  %v147_v0 = vadd.f32 %v146_v60, %v145_v56 }
  0x3e   :  { %v127_v5 = vrot.slane %v126_v61, 2  ;;  %v134_v6 = vrot.slane %v133_v62, 2  ;;  %v141_v7 = vrot.slane %v140_v63, 2  ;;  %v148_v8 = vrot.slane %v147_v0, 2 }
  0x40   :  { %v128_v10 = vadd.f32 %v127_v5, %v126_v61  ;;  %v135_v11 = vadd.f32 %v134_v6, %v133_v62  ;;  %v142_v12 = vadd.f32 %v141_v7, %v140_v63  ;;  %v149_v13 = vadd.f32 %v148_v8, %v147_v0  ;;  %v169_v14 = vld.sshfl [vmem:[#allocation1] sm:$0xff pattern:$0x75316420]  ;;  %v170_v15 = vld.sshfl [vmem:[#allocation1 + $0x8] sm:$0xff pattern:$0x75316420] }
  0x41   :  { %v171_v16 = vld.sshfl [vmem:[#allocation1 + $0x10] sm:$0xff pattern:$0x75316420]  ;;  %v172_v17 = vld.sshfl [vmem:[#allocation1 + $0x18] sm:$0xff pattern:$0x75316420] }
  0x42   :  { %v129_v18 = vrot.slane %v128_v10, 1  ;;  %v136_v19 = vrot.slane %v135_v11, 1  ;;  %v143_v20 = vrot.slane %v142_v12, 1  ;;  %v150_v21 = vrot.slane %v149_v13, 1  ;;  %209 = vst [vmem:[#allocation1] ss:$2 sm:$0xff] %v205_v2 }
  0x43   :  { %v177_v3 = vsel %vm66_vm1, %v169_v14, 0.0  ;;  %v184_v22 = vsel %vm66_vm1, %v170_v15, 0.0  ;;  %v191_v23 = vsel %vm66_vm1, %v171_v16, 0.0  ;;  %v198_v4 = vsel %vm66_vm1, %v172_v17, 0.0  ;;  %211 = vst [vmem:[#allocation1 + $0x10] ss:$2 sm:$0xff] %v206_v9 }
  0x44   :  { %v130_v24 = vadd.f32 %v129_v18, %v128_v10  ;;  %v137_v25 = vadd.f32 %v136_v19, %v135_v11  ;;  %v144_v26 = vadd.f32 %v143_v20, %v142_v12  ;;  %v151_v27 = vadd.f32 %v150_v21, %v149_v13 }
  0x45   :  { %v178_v28 = vrot.slane %v177_v3, 4  ;;  %v185_v29 = vrot.slane %v184_v22, 4  ;;  %v192_v30 = vrot.slane %v191_v23, 4  ;;  %v199_v31 = vrot.slane %v198_v4, 4 }
  0x46   :  { %336 = vlog2.f32 %v130_v24 }
  0x47   :  { %338 = vlog2.f32 %v137_v25  ;;  %v179_v32 = vadd.f32 %v178_v28, %v177_v3  ;;  %v186_v37 = vadd.f32 %v185_v29, %v184_v22  ;;  %v193_v38 = vadd.f32 %v192_v30, %v191_v23 }
  0x48   :  { %340 = vlog2.f32 %v144_v26  ;;  %v200_v39 = vadd.f32 %v199_v31, %v198_v4 }
  0x49   :  { %342 = vlog2.f32 %v151_v27  ;;  %v180_v40 = vrot.slane %v179_v32, 2  ;;  %v187_v41 = vrot.slane %v186_v37, 2  ;;  %v194_v42 = vrot.slane %v193_v38, 2  ;;  %v212_v43 = vld.sshfl [vmem:[#allocation1] sm:$0xff pattern:$0x75316420] }
  0x4a   :  { %v201_v44 = vrot.slane %v200_v39, 2  ;;  %v213_v45 = vld.sshfl [vmem:[#allocation1 + $0x8] sm:$0xff pattern:$0x75316420]  ;;  %v220_v46 = vsel %vm66_vm1, %v212_v43, 0.0 }
  0x4b   :  { %v188_v47 = vadd.f32 %v187_v41, %v186_v37  ;;  %v214_v48 = vld.sshfl [vmem:[#allocation1 + $0x10] sm:$0xff pattern:$0x75316420]  ;;  %v181_v50 = vadd.f32 %v180_v40, %v179_v32  ;;  %v195_v51 = vadd.f32 %v194_v42, %v193_v38  ;;  %v221_v52 = vrot.slane %v220_v46, 4 }
  0x4c   :  { %v337_v49 = vpop.eup %336  ;;  %v227_v53 = vsel %vm66_vm1, %v213_v45, 0.0  ;;  %v202_v55 = vadd.f32 %v201_v44, %v200_v39  ;;  %v234_v56 = vsel %vm66_vm1, %v214_v48, 0.0  ;;  %v215_v63 = vld.sshfl [vmem:[#allocation1 + $0x18] sm:$0xff pattern:$0x75316420] }
  0x4d   :  { %v339_v54 = vpop.eup %338  ;;  %v189_v59 = vrot.slane %v188_v47, 1  ;;  %v222_v60 = vadd.f32 %v221_v52, %v220_v46  ;;  %v228_v61 = vrot.slane %v227_v53, 4  ;;  %v153_v0 = vmul.f32 0.6931472, %v337_v49  ;;  %v256_v49 = vld [vmem:[#allocation2] sm:$0xf] }
  0x4e   :  { %v341_v57 = vpop.eup %340  ;;  %v155_v58 = vmul.f32 0.6931472, %v339_v54  ;;  %v182_v5 = vrot.slane %v181_v50, 1  ;;  %v196_v6 = vrot.slane %v195_v51, 1  ;;  %v203_v7 = vrot.slane %v202_v55, 1 }
  0x4f   :  { %v343_v62 = vpop.eup %342  ;;  %v157_v2 = vmul.f32 0.6931472, %v341_v57  ;;  %v223_v8 = vrot.slane %v222_v60, 2  ;;  %v229_v9 = vadd.f32 %v228_v61, %v227_v53  ;;  %v235_v10 = vrot.slane %v234_v56, 4 }
  0x50   :  { %v159_v11 = vmul.f32 0.6931472, %v343_v62  ;;  %v161_v12 = vadd.f32 %v155_v58, %v465_v34  ;;  %v190_v13 = vadd.f32 %v189_v59, %v188_v47  ;;  %v241_v14 = vsel %vm66_vm1, %v215_v63, 0.0 }
  0x51   :  { %v224_v15 = vadd.f32 %v223_v8, %v222_v60  ;;  %v230_v16 = vrot.slane %v229_v9, 2  ;;  %v236_v17 = vadd.f32 %v235_v10, %v234_v56  ;;  %v242_v18 = vrot.slane %v241_v14, 4 }
  0x52   :  { %v160_v19 = vadd.f32 %v153_v0, %v463_v33  ;;  %v162_v20 = vadd.f32 %v157_v2, %v467_v35  ;;  %v183_v21 = vadd.f32 %v182_v5, %v181_v50  ;;  %v197_v3 = vadd.f32 %v196_v6, %v195_v51 }
  0x53   :  { %v225_v22 = vrot.slane %v224_v15, 1  ;;  %v231_v23 = vadd.f32 %v230_v16, %v229_v9  ;;  %v237_v4 = vrot.slane %v236_v17, 2  ;;  %v243_v24 = vadd.f32 %v242_v18, %v241_v14 }
  0x54   :  { %v163_v25 = vadd.f32 %v159_v11, %v469_v36  ;;  %v204_v34 = vadd.f32 %v203_v7, %v202_v55  ;;  %v249_v29 = vmul.f32 %v190_v13, %v161_v12  ;;  %v248_v30 = vmul.f32 %v183_v21, %v160_v19 }
  0x55   :  { %v232_v26 = vrot.slane %v231_v23, 1  ;;  %v238_v27 = vadd.f32 %v237_v4, %v236_v17  ;;  %v244_v28 = vrot.slane %v243_v24, 2  ;;  %v250_v31 = vmul.f32 %v197_v3, %v162_v20 }
  0x56   :  { %v226_v32 = vadd.f32 %v225_v22, %v224_v15  ;;  %v251_v40 = vmul.f32 %v204_v34, %v163_v25 }
  0x57   :  { %v233_v37 = vadd.f32 %v232_v26, %v231_v23  ;;  %v239_v33 = vrot.slane %v238_v27, 1  ;;  %v245_v38 = vadd.f32 %v244_v28, %v243_v24 }
  0x58   :  { %v252_v43 = vsub.f32 %v248_v30, %v226_v32 }
  0x59   :  { %v240_v35 = vadd.f32 %v239_v33, %v238_v27  ;;  %v246_v39 = vrot.slane %v245_v38, 1  ;;  %v253_v41 = vsub.f32 %v249_v29, %v233_v37 }
  0x5b   :  { %v247_v42 = vadd.f32 %v246_v39, %v245_v38  ;;  %v254_v44 = vsub.f32 %v250_v31, %v240_v35  ;;  %v261_v45 = vrot.slane %v253_v41, 7 }
  0x5d   :  { %v255_v36 = vsub.f32 %v251_v40, %v247_v42  ;;  %v262_v46 = vrot.slane %v254_v44, 6  ;;  %v265_v48 = vsel %vm264_vm2, %v252_v43, %v261_v45 }
  0x5f   :  { %v263_v47 = vrot.slane %v255_v36, 5 }
  0x61   :  { %v267_v50 = vsel %vm266_vm3, %v262_v46, %v263_v47 }
  0x62   :  { %v269_v51 = vsel %vm268_vm4, %v265_v48, %v267_v50 }
  0x63   :  { %v271_v52 = vadd.f32 %v269_v51, %v256_v49 }
  0x65   :  { %276 = vst.msk [vmem:[#allocation2] sm:$0xf] %vm447_vm0, %v271_v52 }
  0x6c   :  { %v280_v53 = vld [vmem:[#allocation2] sm:$0xf] }
  0x6d   :  { %v282_v54 = vperm.slane %v280_v53, 0  ;;  %v283_v55 = vperm.slane %v280_v53, 1  ;;  %v284_v56 = vperm.slane %v280_v53, 2  ;;  %v285_v57 = vperm.slane %v280_v53, 3 }
  0x6f   :  { %v290_v58 = vsel %vm264_vm2, %v282_v54, 0.0  ;;  %v291_v59 = vsel %vm264_vm2, %v283_v55, 0.0  ;;  %v293_v60 = vsel %vm264_vm2, %v284_v56, 0.0  ;;  %v295_v62 = vsel %vm264_vm2, %v285_v57, 0.0 }
  0x70   :  { %v292_v61 = vadd.f32 %v291_v59, %v290_v58 }
  0x72   :  { %v294_v63 = vadd.f32 %v293_v60, %v292_v61 }
  0x74   :  { %v296_v0 = vadd.f32 %v295_v62, %v294_v63 }
  0x76   :  { %297 = vadd.xlane.f32.xlu0 %v296_v0 }
  0xe9   :  { %v298_v2 = vpop.xlane.xlu0 %297 }
  0xea   :  { %v299_v1 = vrot.slane %v298_v2, 4 }
  0xec   :  { %v300_v5 = vadd.f32 %v299_v1, %v298_v2 }
  0xee   :  { %v301_v6 = vrot.slane %v300_v5, 2 }
  0xf0   :  { %v302_v7 = vadd.f32 %v301_v6, %v300_v5 }
  0xf2   :  { %v303_v8 = vrot.slane %v302_v7, 1 }
  0xf4   :  { %v304_v9 = vadd.f32 %v303_v8, %v302_v7 }
  0xf6   :  { %326 = vpush %v304_v9 }
 0x127   :  { %s327_s22 = spop %326 }
 0x128   :  { %v306_v10 = vstv %s327_s22 }
 0x129   :  { %307 = vst [vmem:[#allocation8] sm:$0x1] %v306_v10 }
 0x12a   :  { %318 = dma.vmem_to_hbm [thread:$0]  %s314_s1, 16, %s316_s21, [#allocation5]  }
 0x12b   :  { %420 = dma.done.wait [#allocation5], 16  }
 0x12c   :  { %421 = vsyncadd [#allocation5], 4294967280 }
 0x12d   :  { %323 = vsyncpa [#allocation4], 1 }
 0x12e   :  { %324 = vsyncpa [#allocation7], 1 }
 0x12f   :  { %325 = vsyncpa [#allocation5], 1 }

</bundles_post_ra>
